<compile_context>
chip_gen: v5e
topology: v5e:2x2
jax: 0.10.0
libtpu: 0.0.40
codegen_flags: <defaults>
</compile_context>

<pallas_src>
import functools

import jax
import jax.numpy as jnp
from jax import lax
from jax.experimental import pallas as pl
from jax.experimental.pallas import tpu as pltpu

ALPHA = 0.9
GAMMA = 2

_LANES = 128
_SUBLANES = 8
_ROW_ALIGN = 32   # covers f32 (8,128), bf16 (16,128), int8/bool (32,128) tilings


def _bce_partial_sums_kernel(p_ref, t_ref, out_ref, *, block_rows, chunk_rows,
                             rows_per_slice, total_rows, hard_targets):
    """Accumulate elementwise BCE of one (block_rows, 128) tile into the (8, 128)
    partial-sum block owned by the current parallel slice."""
    pi = pl.program_id(0)   # parallel slice (megacore axis on v7x)
    si = pl.program_id(1)   # sequential reduction step within the slice

    @pl.when(si == 0)
    def _():
        out_ref[...] = jnp.zeros_like(out_ref)

    row0 = pi * rows_per_slice + si * block_rows
    n_chunks = block_rows // chunk_rows
    unroll = n_chunks <= 8

    def _chunk_bce(ci):
        r = pl.multiple_of(ci * chunk_rows, chunk_rows)
        p = p_ref[pl.ds(r, chunk_rows), :].astype(jnp.float32)
        if hard_targets:
            t = t_ref[pl.ds(r, chunk_rows), :]
            if jnp.issubdtype(t.dtype, jnp.bool_):
                sel = t
            elif jnp.issubdtype(t.dtype, jnp.floating):
                sel = t.astype(jnp.float32) >= 0.5
            else:
                sel = t != 0
            # Single EUP log + one select; exact for 0/1 targets (clamp matches torch).
            return -jnp.maximum(jnp.log(jnp.where(sel, p, 1.0 - p)), -100.0)
        else:
            t = t_ref[pl.ds(r, chunk_rows), :].astype(jnp.float32)
            log_p = jnp.maximum(jnp.log(p), -100.0)
            log_1mp = jnp.maximum(jnp.log(1.0 - p), -100.0)
            # == -(t*log_p + (1-t)*log_1mp) with one fewer sub/mul.
            return -(log_1mp + t * (log_p - log_1mp))

    def _accumulate(masked):
        def body(ci, acc):
            bce = _chunk_bce(ci)
            if masked:
                # Select (not multiply) so NaN/Inf from garbage lanes is discarded;
                # the -100 clamp is applied before this mask.
                ri = (row0 + ci * chunk_rows
                      + lax.broadcasted_iota(jnp.int32, (chunk_rows, 1), 0))
                bce = jnp.where(ri < total_rows, bce, 0.0)
            # Fold the chunk into the (8, 128) accumulator: vreg adds only.
            return acc + bce.reshape(-1, _SUBLANES, _LANES).sum(axis=0)

        acc0 = jnp.zeros((_SUBLANES, _LANES), jnp.float32)
        acc = lax.fori_loop(0, n_chunks, body, acc0, unroll=unroll)
        out_ref[...] += acc

    # Only the last block of a slice (or a clamped duplicate block) can be partial;
    # interior blocks take the mask-free path.
    may_be_partial = row0 + block_rows > total_rows

    @pl.when(jnp.logical_not(may_be_partial))
    def _():
        _accumulate(masked=False)

    @pl.when(may_be_partial)
    def _():
        _accumulate(masked=True)


def _device_defaults():
    kind = ""
    try:
        kind = jax.devices()[0].device_kind.lower()
    except Exception:
        pass
    big_blocks = ("v6" in kind) or ("v7" in kind) or ("7x" in kind)
    block_rows = 8192 if big_blocks else 2048          # 4 MiB vs 1 MiB f32 blocks
    n_slices = 2 if (("v7" in kind) or ("7x" in kind)) else 1   # megacore only on v7x
    return block_rows, n_slices


def focal_loss(inputs, targets, alpha=ALPHA, gamma=GAMMA, *,
               hard_targets=None, max_block_rows=None, num_slices=None):
    """inputs/targets: any (matching) shape; probabilities / targets in [0, 1].
    Dtypes are passed through to the kernel unchanged (bf16/f16/f32 probabilities,
    int8/bool/float targets)."""
    auto_rows, auto_slices = _device_defaults()
    if max_block_rows is None:
        max_block_rows = auto_rows
    if num_slices is None:
        num_slices = auto_slices

    p = jnp.asarray(inputs).reshape(-1)
    t = jnp.asarray(targets).reshape(-1)
    if jnp.issubdtype(t.dtype, jnp.bool_):
        t = t.astype(jnp.int8)          # same byte count, simpler Mosaic lowering
    if hard_targets is None:
        hard_targets = bool(jnp.issubdtype(t.dtype, jnp.integer))
    n = p.shape[0]

    # Only lane-misaligned inputs pay a padding copy; n % 128 == 0 reshapes for free.
    rem = n % _LANES
    if rem:
        pad = _LANES - rem
        p = jnp.concatenate([p, jnp.ones((pad,), p.dtype)])   # p=1, t=1 -> zero BCE
        t = jnp.concatenate([t, jnp.ones((pad,), t.dtype)])
    rows = p.shape[0] // _LANES
    p2 = p.reshape(rows, _LANES)
    t2 = t.reshape(rows, _LANES)

    # Guarantee at least one 32-row tile (tiny inputs only; neutral padding).
    if rows < _ROW_ALIGN:
        extra = _ROW_ALIGN - rows
        p2 = jnp.concatenate([p2, jnp.ones((extra, _LANES), p2.dtype)])
        t2 = jnp.concatenate([t2, jnp.ones((extra, _LANES), t2.dtype)])
        rows = _ROW_ALIGN

    # Block rows: multiple of 32 (bf16/int8 tiling), never larger than the array.
    max_block_rows = max(_ROW_ALIGN,
                         ((int(max_block_rows) + _ROW_ALIGN - 1) // _ROW_ALIGN) * _ROW_ALIGN)
    block_rows = min(max_block_rows, (rows // _ROW_ALIGN) * _ROW_ALIGN)
    nblocks = pl.cdiv(rows, block_rows)

    # Parallel slices split the reduction across the two TensorCores on v7x only.
    num_slices = max(1, min(int(num_slices), nblocks))
    steps = pl.cdiv(nblocks, num_slices)
    rows_per_slice = steps * block_rows

    # In-kernel accumulation chunk (<=256 rows keeps the f32 intermediate in vregs).
    chunk_rows = block_rows
    for c in (256, 128, 64, 32):
        if block_rows % c == 0:
            chunk_rows = c
            break

    def in_map(pi, si):
        # Clamp so a (slice, step) past the last block never issues a fully
        # out-of-bounds DMA; its contribution is zeroed by the in-kernel row mask.
        return (jnp.minimum(pi * steps + si, nblocks - 1), 0)

    partials = pl.pallas_call(
        functools.partial(
            _bce_partial_sums_kernel,
            block_rows=block_rows,
            chunk_rows=chunk_rows,
            rows_per_slice=rows_per_slice,
            total_rows=rows,
            hard_targets=hard_targets,
        ),
        out_shape=jax.ShapeDtypeStruct((num_slices * _SUBLANES, _LANES), jnp.float32),
        grid_spec=pltpu.PrefetchScalarGridSpec(
            num_scalar_prefetch=0,
            grid=(num_slices, steps),
            in_specs=[
                pl.BlockSpec((block_rows, _LANES), in_map),
                pl.BlockSpec((block_rows, _LANES), in_map),
            ],
            out_specs=pl.BlockSpec((_SUBLANES, _LANES), lambda pi, si: (pi, 0)),
        ),
        compiler_params=pltpu.CompilerParams(
            dimension_semantics=("parallel", "arbitrary")
        ),
    )(p2, t2)

    # Finalize in plain JAX: one trivial reduce + focal transform (XLA fuses it;
    # no second kernel dispatch / HBM round trip).
    bce_mean = jnp.sum(partials) / jnp.float32(n)
    bce_exp = jnp.exp(-bce_mean)
    return jnp.float32(alpha) * (1.0 - bce_exp) ** gamma * bce_mean


def _reference_focal_loss(inputs, targets, alpha=ALPHA, gamma=GAMMA):
    p = jnp.asarray(inputs, jnp.float32).reshape(-1)
    t = jnp.asarray(targets, jnp.float32).reshape(-1)
    log_p = jnp.maximum(jnp.log(p), -100.0)
    log_1mp = jnp.maximum(jnp.log(1.0 - p), -100.0)
    bce = jnp.mean(-(t * log_p + (1.0 - t) * log_1mp))
    return alpha * (1.0 - jnp.exp(-bce)) ** gamma * bce


if __name__ == "__main__":
    key = jax.random.PRNGKey(0)
    k1, k2, k3, k4, k5, k6 = jax.random.split(key, 6)

    # Primary check: NCHW probabilities + float 0/1 mask (exact two-log soft path).
    shape = (2, 4, 16, 16)
    inputs = jax.random.uniform(k1, shape, jnp.float32, minval=0.01, maxval=0.99)
    targets = (jax.random.uniform(k2, shape, jnp.float32) > 0.5).astype(jnp.float32)
    loss = focal_loss(inputs, targets)
    jax.block_until_ready(loss)
    ref = _reference_focal_loss(inputs, targets)
    assert jnp.allclose(loss, ref, rtol=1e-5, atol=1e-5), (loss, ref)

    # Multi-block / two-slice / clamped-duplicate / partial-tail path with int8 hard
    # targets (single-log fast path).  46080 elems -> 360 rows -> 3 blocks of 128 rows
    # -> grid (2, 2) with one fully-masked clamped step.
    shape2 = (2, 4, 40, 144)
    inputs2 = jax.random.uniform(k3, shape2, jnp.float32, minval=0.01, maxval=0.99)
    targets2 = (jax.random.uniform(k4, shape2, jnp.float32) > 0.5).astype(jnp.int8)
    loss2 = focal_loss(inputs2, targets2, max_block_rows=128, num_slices=2)
    jax.block_until_ready(loss2)
    ref2 = _reference_focal_loss(inputs2, targets2.astype(jnp.float32))
    assert jnp.allclose(loss2, ref2, rtol=1e-5, atol=1e-5), (loss2, ref2)

    # Lane-misaligned bf16 probabilities + bool mask (231 elems -> neutral padding,
    # tiny-tile path, bool->int8 hard-target path).
    shape3 = (1, 3, 7, 11)
    inputs3 = jax.random.uniform(k5, shape3, jnp.float32, minval=0.01,
                                 maxval=0.99).astype(jnp.bfloat16)
    targets3 = jax.random.uniform(k6, shape3, jnp.float32) > 0.5   # bool
    loss3 = focal_loss(inputs3, targets3)
    jax.block_until_ready(loss3)
    ref3 = _reference_focal_loss(inputs3.astype(jnp.float32),
                                 targets3.astype(jnp.float32))
    assert jnp.allclose(loss3, ref3, rtol=1e-4, atol=1e-4), (loss3, ref3)

    print("KERNEL_OK")
</pallas_src>

<mosaic_0001>
module attributes {stable_mosaic.version = 11 : i64} {
  func.func @_bce_partial_sums_kernel(%arg0: i32, %arg1: i32, %arg2: memref<32x128xf32, #tpu.memory_space<vmem>>, %arg3: memref<32x128xf32, #tpu.memory_space<vmem>>, %arg4: memref<8x128xf32, #tpu.memory_space<vmem>>) attributes {dimension_semantics = [#tpu.dimension_semantics<parallel>, #tpu.dimension_semantics<arbitrary>], iteration_bounds = array<i64: 1, 1>, scalar_prefetch = 0 : i64, scratch_operands = 0 : i64, tpu.core_type = #tpu.core_type<tc>, window_params = [{transform_indices = @transform_0, window_bounds = array<i64: 32, 128>}, {transform_indices = @transform_1, window_bounds = array<i64: 32, 128>}, {transform_indices = @transform_2, window_bounds = array<i64: 8, 128>}]} {
    %c0_i32 = arith.constant 0 : i32
    %0 = arith.cmpi eq, %arg1, %c0_i32 : i32
    %1 = arith.extui %0 : i1 to i32
    %c0_i32_0 = arith.constant 0 : i32
    %2 = arith.cmpi ne, %1, %c0_i32_0 : i32
    scf.if %2 {
      %cst = arith.constant 0.000000e+00 : f32
      %13 = vector.broadcast %cst : f32 to vector<8x128xf32>
      %c0 = arith.constant 0 : index
      %c0_6 = arith.constant 0 : index
      %14 = vector.load %arg4[%c0, %c0_6] : memref<8x128xf32, #tpu.memory_space<vmem>>, vector<8x128xf32>
      tpu.vector_store %arg4[%c0, %c0_6], %13 {strides = array<i32>} : memref<8x128xf32, #tpu.memory_space<vmem>>, vector<8x128xf32>,
    } else {
    }
    %c32_i32 = arith.constant 32 : i32
    %3 = arith.muli %arg0, %c32_i32 : i32
    %c32_i32_1 = arith.constant 32 : i32
    %4 = arith.muli %arg1, %c32_i32_1 : i32
    %5 = arith.addi %3, %4 : i32
    %c32_i32_2 = arith.constant 32 : i32
    %6 = arith.addi %5, %c32_i32_2 : i32
    %c32_i32_3 = arith.constant 32 : i32
    %7 = arith.cmpi sgt, %6, %c32_i32_3 : i32
    %true = arith.constant true
    %8 = arith.xori %7, %true : i1
    %9 = arith.extui %8 : i1 to i32
    %c0_i32_4 = arith.constant 0 : i32
    %10 = arith.cmpi ne, %9, %c0_i32_4 : i32
    scf.if %10 {
      %cst = arith.constant 0.000000e+00 : f32
      %13 = vector.broadcast %cst : f32 to vector<8x128xf32>
      %c0_i32_6 = arith.constant 0 : i32
      %c32_i32_7 = arith.constant 32 : i32
      %14 = arith.muli %c0_i32_6, %c32_i32_7 : i32
      %15 = tpu.assume_multiple %14, 32 : i32
      %16 = arith.index_cast %15 : i32 to index
      %c0 = arith.constant 0 : index
      %17 = vector.load %arg2[%16, %c0] : memref<32x128xf32, #tpu.memory_space<vmem>>, vector<32x128xf32>
      %18 = arith.index_cast %15 : i32 to index
      %c0_8 = arith.constant 0 : index
      %19 = vector.load %arg3[%18, %c0_8] : memref<32x128xf32, #tpu.memory_space<vmem>>, vector<32x128xf32>
      %20 = math.log %17 : vector<32x128xf32>
      %cst_9 = arith.constant -1.000000e+02 : f32
      %21 = vector.broadcast %cst_9 : f32 to vector<32x128xf32>
      %22 = arith.maximumf %20, %21 : vector<32x128xf32>
      %cst_10 = arith.constant 1.000000e+00 : f32
      %23 = vector.broadcast %cst_10 : f32 to vector<32x128xf32>
      %24 = arith.subf %23, %17 : vector<32x128xf32>
      %25 = math.log %24 : vector<32x128xf32>
      %cst_11 = arith.constant -1.000000e+02 : f32
      %26 = vector.broadcast %cst_11 : f32 to vector<32x128xf32>
      %27 = arith.maximumf %25, %26 : vector<32x128xf32>
      %28 = arith.subf %22, %27 : vector<32x128xf32>
      %29 = arith.mulf %19, %28 : vector<32x128xf32>
      %30 = arith.addf %27, %29 : vector<32x128xf32>
      %cst_12 = arith.constant 0.000000e+00 : f32
      %31 = vector.broadcast %cst_12 : f32 to vector<32x128xf32>
      %32 = arith.subf %31, %30 : vector<32x128xf32>
      %33 = vector.shape_cast %32 : vector<32x128xf32> to vector<4x8x128xf32>
      %cst_13 = arith.constant dense<0.000000e+00> : vector<8x128xf32>
      %34 = vector.multi_reduction <add>, %33, %cst_13 [0] : vector<4x8x128xf32> to vector<8x128xf32>
      %35 = arith.addf %13, %34 : vector<8x128xf32>
      %c1_i32 = arith.constant 1 : i32
      %c0_14 = arith.constant 0 : index
      %c0_15 = arith.constant 0 : index
      %36 = vector.load %arg4[%c0_14, %c0_15] : memref<8x128xf32, #tpu.memory_space<vmem>>, vector<8x128xf32>
      %37 = arith.addf %36, %35 : vector<8x128xf32>
      %c0_16 = arith.constant 0 : index
      %c0_17 = arith.constant 0 : index
      %38 = vector.load %arg4[%c0_16, %c0_17] : memref<8x128xf32, #tpu.memory_space<vmem>>, vector<8x128xf32>
      tpu.vector_store %arg4[%c0_16, %c0_17], %37 {strides = array<i32>} : memref<8x128xf32, #tpu.memory_space<vmem>>, vector<8x128xf32>,
    } else {
    }
    %11 = arith.extui %7 : i1 to i32
    %c0_i32_5 = arith.constant 0 : i32
    %12 = arith.cmpi ne, %11, %c0_i32_5 : i32
    scf.if %12 {
      %cst = arith.constant 0.000000e+00 : f32
      %13 = vector.broadcast %cst : f32 to vector<8x128xf32>
      %c0_i32_6 = arith.constant 0 : i32
      %c32_i32_7 = arith.constant 32 : i32
      %14 = arith.muli %c0_i32_6, %c32_i32_7 : i32
      %15 = tpu.assume_multiple %14, 32 : i32
      %16 = arith.index_cast %15 : i32 to index
      %c0 = arith.constant 0 : index
      %17 = vector.load %arg2[%16, %c0] : memref<32x128xf32, #tpu.memory_space<vmem>>, vector<32x128xf32>
      %18 = arith.index_cast %15 : i32 to index
      %c0_8 = arith.constant 0 : index
      %19 = vector.load %arg3[%18, %c0_8] : memref<32x128xf32, #tpu.memory_space<vmem>>, vector<32x128xf32>
      %20 = math.log %17 : vector<32x128xf32>
      %cst_9 = arith.constant -1.000000e+02 : f32
      %21 = vector.broadcast %cst_9 : f32 to vector<32x128xf32>
      %22 = arith.maximumf %20, %21 : vector<32x128xf32>
      %cst_10 = arith.constant 1.000000e+00 : f32
      %23 = vector.broadcast %cst_10 : f32 to vector<32x128xf32>
      %24 = arith.subf %23, %17 : vector<32x128xf32>
      %25 = math.log %24 : vector<32x128xf32>
      %cst_11 = arith.constant -1.000000e+02 : f32
      %26 = vector.broadcast %cst_11 : f32 to vector<32x128xf32>
      %27 = arith.maximumf %25, %26 : vector<32x128xf32>
      %28 = arith.subf %22, %27 : vector<32x128xf32>
      %29 = arith.mulf %19, %28 : vector<32x128xf32>
      %30 = arith.addf %27, %29 : vector<32x128xf32>
      %cst_12 = arith.constant 0.000000e+00 : f32
      %31 = vector.broadcast %cst_12 : f32 to vector<32x128xf32>
      %32 = arith.subf %31, %30 : vector<32x128xf32>
      %c32_i32_13 = arith.constant 32 : i32
      %33 = arith.muli %c0_i32_6, %c32_i32_13 : i32
      %34 = arith.addi %5, %33 : i32
      %35 = tpu.iota {dimensions = array<i32: 0>} : vector<32x1xi32>
      %36 = vector.broadcast %34 : i32 to vector<32x1xi32>
      %37 = arith.addi %36, %35 : vector<32x1xi32>
      %c32_i32_14 = arith.constant 32 : i32
      %38 = vector.broadcast %c32_i32_14 : i32 to vector<32x1xi32>
      %39 = arith.cmpi slt, %37, %38 : vector<32x1xi32>
      %cst_15 = arith.constant 0.000000e+00 : f32
      %40 = vector.shape_cast %39 : vector<32x1xi1> to vector<32x1xi1>
      %41 = vector.broadcast %40 : vector<32x1xi1> to vector<32x128xi1>
      %42 = vector.broadcast %cst_15 : f32 to vector<32x128xf32>
      %43 = arith.select %41, %32, %42 : vector<32x128xi1>, vector<32x128xf32>
      %44 = vector.shape_cast %43 : vector<32x128xf32> to vector<4x8x128xf32>
      %cst_16 = arith.constant dense<0.000000e+00> : vector<8x128xf32>
      %45 = vector.multi_reduction <add>, %44, %cst_16 [0] : vector<4x8x128xf32> to vector<8x128xf32>
      %46 = arith.addf %13, %45 : vector<8x128xf32>
      %c1_i32 = arith.constant 1 : i32
      %c0_17 = arith.constant 0 : index
      %c0_18 = arith.constant 0 : index
      %47 = vector.load %arg4[%c0_17, %c0_18] : memref<8x128xf32, #tpu.memory_space<vmem>>, vector<8x128xf32>
      %48 = arith.addf %47, %46 : vector<8x128xf32>
      %c0_19 = arith.constant 0 : index
      %c0_20 = arith.constant 0 : index
      %49 = vector.load %arg4[%c0_19, %c0_20] : memref<8x128xf32, #tpu.memory_space<vmem>>, vector<8x128xf32>
      tpu.vector_store %arg4[%c0_19, %c0_20], %48 {strides = array<i32>} : memref<8x128xf32, #tpu.memory_space<vmem>>, vector<8x128xf32>,
    } else {
    }
    return
  }
  func.func @transform_0(%arg0: i32, %arg1: i32) -> (i32, i32) {
    %c1_i32 = arith.constant 1 : i32
    %0 = arith.muli %arg0, %c1_i32 : i32
    %1 = arith.addi %0, %arg1 : i32
    %c0_i32 = arith.constant 0 : i32
    %2 = arith.minsi %1, %c0_i32 : i32
    %c0_i32_0 = arith.constant 0 : i32
    %c0_i32_1 = arith.constant 0 : i32
    return %2, %c0_i32_0 : i32, i32
  }
  func.func @transform_1(%arg0: i32, %arg1: i32) -> (i32, i32) {
    %c1_i32 = arith.constant 1 : i32
    %0 = arith.muli %arg0, %c1_i32 : i32
    %1 = arith.addi %0, %arg1 : i32
    %c0_i32 = arith.constant 0 : i32
    %2 = arith.minsi %1, %c0_i32 : i32
    %c0_i32_0 = arith.constant 0 : i32
    %c0_i32_1 = arith.constant 0 : i32
    return %2, %c0_i32_0 : i32, i32
  }
  func.func @transform_2(%arg0: i32, %arg1: i32) -> (i32, i32) {
    %c0_i32 = arith.constant 0 : i32
    %c0_i32_0 = arith.constant 0 : i32
    return %arg0, %c0_i32 : i32, i32
  }
}

</mosaic_0001>

<bundles_post_ra>
// kernel: tpu_custom_call.1
= control target key start
LH: loop header
LB: loop body
LE: loop exit
PB: predicated region body
PF: predicated region fallthrough
CT: control target
= control target key end

     0   :  { %7 = vsyncpa [#allocation3], 0  ;;  %s376_s0 = inlined_call_operand.hbm [shape: f32[32,128], index: 0, kind: input, shape index: {}]   ;;  %s377_s1 = inlined_call_operand.hbm [shape: f32[32,128], index: 1, kind: input, shape index: {}]   ;;  %s378_s2 = inlined_call_operand.hbm [shape: f32[8,128], index: 2, kind: output, shape index: {}]  }
   0x1   :  { %8 = vsyncpa [#allocation6], 0 }
   0x2   :  { %9 = vsyncpa [#allocation4], 0  ;;  %s20_s11 = sshll.u32 %s376_s0, 4  ;;  %s347_s12 = smov [#allocation2]   ;;  %s21_s11 = int_to_ptr.hbm [resolvable:$true] %s20_s11 }
   0x3   :  { %s22_s13 = sshll.u32 %s347_s12, 4  ;;  %s39_s16 = sshll.u32 %s377_s1, 4  ;;  %s23_s13 = int_to_ptr.vmem [resolvable:$true] %s22_s13  ;;  %s40_s16 = int_to_ptr.hbm [resolvable:$true] %s39_s16 }
   0x4   :  { %s348_s17 = smov 128   ;;  %s349_s18 = smov 8  }
   0x5   :  { %28 = dma.hbm_to_vmem [thread:$0]  %s21_s11, 512, %s23_s13, [#allocation3], %s348_s17, %s348_s17, %s349_s18  }
   0x6   :  { %s350_s19 = smov [#allocation5]  }
   0x7   :  { %s41_s20 = sshll.u32 %s350_s19, 4  ;;  %s42_s20 = int_to_ptr.vmem [resolvable:$true] %s41_s20 }
   0x8   :  { %47 = dma.hbm_to_vmem [thread:$0]  %s40_s16, 512, %s42_s20, [#allocation6], %s348_s17, %s348_s17, %s349_s18  }
   0x9   :  { %341 = dma.done.wait [#allocation3], 512  }
   0xa   :  { %342 = vsyncadd [#allocation3], 4294966784 }
   0xb   :  { %343 = dma.done.wait [#allocation6], 512  }
   0xc   :  { %344 = vsyncadd [#allocation6], 4294966784  ;;  %v78_v0 = vld [vmem:[#allocation2] sm:$0xff]  ;;  %v79_v1 = vld [vmem:[#allocation2 + $0x8] sm:$0xff]  ;;  %s351_s0 = smov [#allocation7]   ;;  %s232_s23 = sshll.u32 %s378_s2, 4  ;;  %s233_s23 = int_to_ptr.hbm [resolvable:$true] %s232_s23 }
   0xd   :  { %v80_v2 = vld [vmem:[#allocation2 + $0x10] sm:$0xff]  ;;  %v81_v3 = vld [vmem:[#allocation2 + $0x18] sm:$0xff]  ;;  %253 = vlog2.f32 %v78_v0  ;;  %v98_v4 = vsub.f32 1.0, %v78_v0  ;;  %v99_v5 = vsub.f32 1.0, %v79_v1  ;;  %v82_v27 = vld [vmem:[#allocation5] sm:$0xff]  ;;  %s230_s1 = sshll.u32 %s351_s0, 4  ;;  %s231_s1 = int_to_ptr.vmem [resolvable:$true] %s230_s1 }
   0xe   :  { %255 = vlog2.f32 %v79_v1  ;;  %v100_v6 = vsub.f32 1.0, %v80_v2  ;;  %v101_v7 = vsub.f32 1.0, %v81_v3  ;;  %v83_v31 = vld [vmem:[#allocation5 + $0x8] sm:$0xff]  ;;  %v84_v34 = vld [vmem:[#allocation5 + $0x10] sm:$0xff]  ;;  %v85_v37 = vld [vmem:[#allocation5 + $0x18] sm:$0xff] }
   0xf   :  { %257 = vlog2.f32 %v80_v2 }
  0x10   :  { %259 = vlog2.f32 %v81_v3 }
  0x11   :  { %261 = vlog2.f32 %v98_v4 }
  0x12   :  { %263 = vlog2.f32 %v99_v5 }
  0x13   :  { %v254_v8 = vpop.eup %253  ;;  %265 = vlog2.f32 %v100_v6 }
  0x14   :  { %v256_v9 = vpop.eup %255  ;;  %v87_v10 = vmul.f32 0.6931472, %v254_v8  ;;  %267 = vlog2.f32 %v101_v7 }
  0x15   :  { %v258_v11 = vpop.eup %257  ;;  %v89_v12 = vmul.f32 0.6931472, %v256_v9 }
  0x16   :  { %v260_v13 = vpop.eup %259  ;;  %v91_v14 = vmul.f32 0.6931472, %v258_v11  ;;  %v94_v18 = vmax.f32 %v87_v10, -100.0 }
  0x17   :  { %v262_v15 = vpop.eup %261  ;;  %v93_v16 = vmul.f32 0.6931472, %v260_v13  ;;  %v95_v21 = vmax.f32 %v89_v12, -100.0 }
  0x18   :  { %v264_v17 = vpop.eup %263  ;;  %v103_v19 = vmul.f32 0.6931472, %v262_v15  ;;  %v96_v24 = vmax.f32 %v91_v14, -100.0 }
  0x19   :  { %v266_v20 = vpop.eup %265  ;;  %v105_v22 = vmul.f32 0.6931472, %v264_v17  ;;  %v97_v28 = vmax.f32 %v93_v16, -100.0 }
  0x1a   :  { %v268_v23 = vpop.eup %267  ;;  %v107_v25 = vmul.f32 0.6931472, %v266_v20  ;;  %v110_v26 = vmax.f32 %v103_v19, -100.0 }
  0x1b   :  { %v109_v29 = vmul.f32 0.6931472, %v268_v23  ;;  %v111_v30 = vmax.f32 %v105_v22, -100.0 }
  0x1c   :  { %v112_v32 = vmax.f32 %v107_v25, -100.0  ;;  %v114_v33 = vsub.f32 %v94_v18, %v110_v26 }
  0x1d   :  { %v113_v35 = vmax.f32 %v109_v29, -100.0  ;;  %v115_v36 = vsub.f32 %v95_v21, %v111_v30 }
  0x1e   :  { %v116_v38 = vsub.f32 %v96_v24, %v112_v32  ;;  %v118_v39 = vmul.f32 %v114_v33, %v82_v27 }
  0x1f   :  { %v117_v40 = vsub.f32 %v97_v28, %v113_v35  ;;  %v119_v41 = vmul.f32 %v115_v36, %v83_v31 }
  0x20   :  { %v120_v42 = vmul.f32 %v116_v38, %v84_v34  ;;  %v122_v43 = vadd.f32 %v118_v39, %v110_v26 }
  0x21   :  { %v121_v44 = vmul.f32 %v117_v40, %v85_v37  ;;  %v123_v45 = vadd.f32 %v119_v41, %v111_v30 }
  0x22   :  { %v124_v46 = vadd.f32 %v120_v42, %v112_v32  ;;  %v126_v47 = vsub.f32 0.0, %v122_v43 }
  0x23   :  { %v125_v48 = vadd.f32 %v121_v44, %v113_v35  ;;  %v127_v49 = vsub.f32 0.0, %v123_v45 }
  0x24   :  { %v128_v50 = vsub.f32 0.0, %v124_v46 }
  0x25   :  { %v129_v51 = vsub.f32 0.0, %v125_v48  ;;  %v130_v52 = vadd.f32 %v127_v49, %v126_v47 }
  0x27   :  { %v131_v53 = vadd.f32 %v130_v52, %v128_v50 }
  0x29   :  { %v132_v54 = vadd.f32 %v131_v53, %v129_v51 }
  0x2b   :  { %136 = vst [vmem:[#allocation7] sm:$0xff] %v132_v54 }
  0x2c   :  { %235 = dma.vmem_to_hbm [thread:$0]  %s231_s1, 128, %s233_s23, [#allocation4]  }
  0x2d   :  { %345 = dma.done.wait [#allocation4], 128  }
  0x2e   :  { %346 = vsyncadd [#allocation4], 4294967168 }
  0x2f   :  { %240 = vsyncpa [#allocation3], 1 }
  0x30   :  { %241 = vsyncpa [#allocation6], 1 }
  0x31   :  { %242 = vsyncpa [#allocation4], 1 }

</bundles_post_ra>
